<compile_context>
chip_gen: v7x
topology: tpu7x:2x2x1
jax: 0.10.0
libtpu: 0.0.40
codegen_flags: <defaults>
</compile_context>

<pallas_src>
import functools

import jax
import jax.numpy as jnp
from jax.experimental import pallas as pl
from jax.experimental.pallas import tpu as pltpu


def _double_conv_kernel(x_ref, m_ref, w1_ref, s1_ref, b1_ref,
                        w2_ref, s2_ref, b2_ref, o_ref, *, H, W):
    """Fused (Conv3x3 + BN + ReLU) x 2 for one image.

    x_ref : (1, Cin, H*W)  channels on sublanes, pixels on lanes (dense)
    m_ref : (9, 1, H*W)    per-tap validity masks (1.0 inside, 0.0 = zero pad)
    w*_ref: (9, Cout, Cin) bf16 conv weights, tap index t = kh*3 + kw
    s*_ref, b*_ref: (Cout, 1) folded BN scale / bias (f32)
    o_ref : (1, Cout, H*W)
    """
    HW = H * W
    x = x_ref[0]                                        # (Cin, HW) f32

    def conv_bn_relu(inp, w_ref, scale, bias):
        cout = w_ref.shape[1]
        acc = jnp.zeros((cout, HW), jnp.float32)        # lane-dense accumulator
        for dh in (-1, 0, 1):
            for dw in (-1, 0, 1):
                t = (dh + 1) * 3 + (dw + 1)
                # Bring x[h+dh, w+dw] to output position (h, w) via a lane
                # roll of the flattened image; the mask zeroes taps that fall
                # outside the image (this realizes padding=1).
                shift = (-(dh * W + dw)) % HW
                shifted = pltpu.roll(inp, shift, axis=1) if shift else inp
                patch = shifted if t == 4 else shifted * m_ref[t]
                acc = acc + jnp.dot(w_ref[t],                       # (Cout,Cin) bf16
                                    patch.astype(jnp.bfloat16),     # (Cin, HW) bf16
                                    preferred_element_type=jnp.float32)
        # Folded BN + ReLU epilogue in f32 (v5e has no bf16 VPU).
        return jnp.maximum(acc * scale + bias, 0.0)

    y1 = conv_bn_relu(x, w1_ref, s1_ref[...], b1_ref[...])    # stays in registers
    y2 = conv_bn_relu(y1, w2_ref, s2_ref[...], b2_ref[...])
    o_ref[0] = y2.astype(o_ref.dtype)                          # dense 256-lane store


def _tap_masks(H, W):
    """(9, 1, H*W) float masks: 1.0 where tap (dh, dw) reads inside the image."""
    r = jnp.arange(H)[:, None]
    c = jnp.arange(W)[None, :]
    masks = []
    for dh in (-1, 0, 1):
        for dw in (-1, 0, 1):
            valid = ((r + dh >= 0) & (r + dh < H) &
                     (c + dw >= 0) & (c + dw < W))
            masks.append(valid.reshape(1, H * W))
    return jnp.stack(masks, axis=0).astype(jnp.float32)


def _double_conv_pallas(x_flat, masks, w1, s1, b1, w2, s2, b2, *, H, W):
    N, Cin, HW = x_flat.shape
    Cout = w1.shape[1]
    kernel = functools.partial(_double_conv_kernel, H=H, W=W)
    return pl.pallas_call(
        kernel,
        out_shape=jax.ShapeDtypeStruct((N, Cout, HW), jnp.float32),
        grid_spec=pltpu.PrefetchScalarGridSpec(
            num_scalar_prefetch=0,
            grid=(N,),                                   # one image per grid step
            in_specs=[
                pl.BlockSpec((1, Cin, HW), lambda n: (n, 0, 0)),
                pl.BlockSpec((9, 1, HW), lambda n: (0, 0, 0)),
                pl.BlockSpec((9, Cout, Cin), lambda n: (0, 0, 0)),
                pl.BlockSpec((Cout, 1), lambda n: (0, 0)),
                pl.BlockSpec((Cout, 1), lambda n: (0, 0)),
                pl.BlockSpec((9, Cout, Cout), lambda n: (0, 0, 0)),
                pl.BlockSpec((Cout, 1), lambda n: (0, 0)),
                pl.BlockSpec((Cout, 1), lambda n: (0, 0)),
            ],
            out_specs=pl.BlockSpec((1, Cout, HW), lambda n: (n, 0, 0)),
        ),
        compiler_params=pltpu.CompilerParams(
            dimension_semantics=("parallel",)),          # megacore / dual-TC split
    )(x_flat, masks, w1, s1, b1, w2, s2, b2)


def init_double_conv_params(key, in_chans, out_chans, eps=1e-5):
    """Deterministic synthetic DoubleConv params, pre-folded for the kernel."""
    ks = jax.random.split(key, 8)

    def stage(cin, cout, kw_, kb_, kg_, kbt_):
        bound = (1.0 / (cin * 9)) ** 0.5
        w = jax.random.uniform(kw_, (cout, cin, 3, 3), jnp.float32, -bound, bound)
        b = jax.random.uniform(kb_, (cout,), jnp.float32, -bound, bound)
        gamma = 1.0 + 0.1 * jax.random.normal(kg_, (cout,), jnp.float32)
        beta = 0.1 * jax.random.normal(kbt_, (cout,), jnp.float32)
        running_mean = jnp.zeros((cout,), jnp.float32)
        running_var = jnp.ones((cout,), jnp.float32)
        # Inference BN folded with the conv bias:
        #   y = ((conv(x) + b) - mean) * gamma / sqrt(var + eps) + beta
        scale = gamma / jnp.sqrt(running_var + eps)
        bias = (b - running_mean) * scale + beta
        # (Cout, Cin, 3, 3) -> (9, Cout, Cin), tap index t = kh*3 + kw.
        w_taps = jnp.transpose(w, (2, 3, 0, 1)).reshape(9, cout, cin)
        return {"w": w_taps.astype(jnp.bfloat16),        # bf16 MXU operands
                "scale": scale.reshape(cout, 1),
                "bias": bias.reshape(cout, 1)}

    return {"conv0": stage(in_chans, out_chans, ks[0], ks[1], ks[2], ks[3]),
            "conv1": stage(out_chans, out_chans, ks[4], ks[5], ks[6], ks[7])}


@jax.jit
def double_conv(x_nchw, params):
    """DoubleConv forward pass.  Input/output are NCHW float32 like PyTorch."""
    N, Cin, H, W = x_nchw.shape
    Cout = params["conv0"]["w"].shape[1]
    # NCHW -> (N, C, H*W): contiguous reshape, pixels become the dense lane axis.
    x_flat = x_nchw.reshape(N, Cin, H * W).astype(jnp.float32)
    masks = _tap_masks(H, W)
    out = _double_conv_pallas(
        x_flat, masks,
        params["conv0"]["w"], params["conv0"]["scale"], params["conv0"]["bias"],
        params["conv1"]["w"], params["conv1"]["scale"], params["conv1"]["bias"],
        H=H, W=W)
    return out.reshape(N, Cout, H, W)


def _reference_double_conv(x_nchw, params):
    """Pure-XLA f32 reference for correctness checking."""
    def stage(x, p):
        cout, cin = p["w"].shape[1], p["w"].shape[2]
        w = (p["w"].astype(jnp.float32)
             .reshape(3, 3, cout, cin).transpose(2, 3, 0, 1))    # -> OIHW
        y = jax.lax.conv_general_dilated(
            x, w, window_strides=(1, 1), padding=((1, 1), (1, 1)),
            dimension_numbers=("NCHW", "OIHW", "NCHW"),
            precision=jax.lax.Precision.HIGHEST)
        y = y * p["scale"].reshape(1, cout, 1, 1) + p["bias"].reshape(1, cout, 1, 1)
        return jnp.maximum(y, 0.0)
    return stage(stage(x_nchw, params["conv0"]), params["conv1"])


if __name__ == "__main__":
    key = jax.random.PRNGKey(0)
    k_x, k_p = jax.random.split(key)

    N, Cin, H, W = 2, 4, 16, 16
    Cout = 8

    x = jax.random.normal(k_x, (N, Cin, H, W), jnp.float32)
    params = init_double_conv_params(k_p, Cin, Cout)

    out = jax.block_until_ready(double_conv(x, params))

    assert out.shape == (N, Cout, H, W), out.shape
    assert bool(jnp.all(out >= 0.0))          # ReLU output is non-negative

    # Correctness vs pure-XLA reference (loose tol: bf16 MXU operands).
    ref = jax.block_until_ready(_reference_double_conv(x, params))
    max_err = float(jnp.max(jnp.abs(out - ref)))
    assert max_err < 5e-2, f"max abs error vs reference: {max_err}"

    print("KERNEL_OK")
</pallas_src>

<mosaic_0001>
module attributes {stable_mosaic.version = 11 : i64} {
  func.func @_double_conv_kernel(%arg0: i32, %arg1: memref<1x4x256xf32, #tpu.memory_space<vmem>>, %arg2: memref<9x1x256xf32, #tpu.memory_space<vmem>>, %arg3: memref<9x8x4xbf16, #tpu.memory_space<vmem>>, %arg4: memref<8x1xf32, #tpu.memory_space<vmem>>, %arg5: memref<8x1xf32, #tpu.memory_space<vmem>>, %arg6: memref<9x8x8xbf16, #tpu.memory_space<vmem>>, %arg7: memref<8x1xf32, #tpu.memory_space<vmem>>, %arg8: memref<8x1xf32, #tpu.memory_space<vmem>>, %arg9: memref<1x8x256xf32, #tpu.memory_space<vmem>>) attributes {dimension_semantics = [#tpu.dimension_semantics<parallel>], iteration_bounds = array<i64: 2>, scalar_prefetch = 0 : i64, scratch_operands = 0 : i64, tpu.core_type = #tpu.core_type<tc>, window_params = [{transform_indices = @transform_0, window_bounds = array<i64: 1, 4, 256>}, {pipeline_mode = #tpu.pipeline_mode<synchronous>, transform_indices = @transform_1, window_bounds = array<i64: 9, 1, 256>}, {pipeline_mode = #tpu.pipeline_mode<synchronous>, transform_indices = @transform_2, window_bounds = array<i64: 9, 8, 4>}, {pipeline_mode = #tpu.pipeline_mode<synchronous>, transform_indices = @transform_3, window_bounds = array<i64: 8, 1>}, {pipeline_mode = #tpu.pipeline_mode<synchronous>, transform_indices = @transform_4, window_bounds = array<i64: 8, 1>}, {pipeline_mode = #tpu.pipeline_mode<synchronous>, transform_indices = @transform_5, window_bounds = array<i64: 9, 8, 8>}, {pipeline_mode = #tpu.pipeline_mode<synchronous>, transform_indices = @transform_6, window_bounds = array<i64: 8, 1>}, {pipeline_mode = #tpu.pipeline_mode<synchronous>, transform_indices = @transform_7, window_bounds = array<i64: 8, 1>}, {transform_indices = @transform_8, window_bounds = array<i64: 1, 8, 256>}]} {
    %c0 = arith.constant 0 : index
    %c0_0 = arith.constant 0 : index
    %c0_1 = arith.constant 0 : index
    %0 = vector.load %arg1[%c0, %c0_0, %c0_1] : memref<1x4x256xf32, #tpu.memory_space<vmem>>, vector<1x4x256xf32>
    %1 = vector.shape_cast %0 : vector<1x4x256xf32> to vector<4x256xf32>
    %c0_2 = arith.constant 0 : index
    %c0_3 = arith.constant 0 : index
    %2 = vector.load %arg4[%c0_2, %c0_3] : memref<8x1xf32, #tpu.memory_space<vmem>>, vector<8x1xf32>
    %c0_4 = arith.constant 0 : index
    %c0_5 = arith.constant 0 : index
    %3 = vector.load %arg5[%c0_4, %c0_5] : memref<8x1xf32, #tpu.memory_space<vmem>>, vector<8x1xf32>
    %cst = arith.constant 0.000000e+00 : f32
    %4 = vector.broadcast %cst : f32 to vector<8x256xf32>
    %c17_i32 = arith.constant 17 : i32
    %5 = tpu.dynamic_rotate %1 by %c17_i32 dim 1 : vector<4x256xf32>, i32 -> vector<4x256xf32>
    %c0_6 = arith.constant 0 : index
    %c0_7 = arith.constant 0 : index
    %c0_8 = arith.constant 0 : index
    %6 = vector.load %arg2[%c0_6, %c0_7, %c0_8] : memref<9x1x256xf32, #tpu.memory_space<vmem>>, vector<1x1x256xf32>
    %7 = vector.shape_cast %6 : vector<1x1x256xf32> to vector<1x256xf32>
    %8 = vector.broadcast %7 : vector<1x256xf32> to vector<4x256xf32>
    %9 = arith.mulf %5, %8 : vector<4x256xf32>
    %c0_9 = arith.constant 0 : index
    %c0_10 = arith.constant 0 : index
    %c0_11 = arith.constant 0 : index
    %10 = vector.load %arg3[%c0_9, %c0_10, %c0_11] : memref<9x8x4xbf16, #tpu.memory_space<vmem>>, vector<1x8x4xbf16>
    %11 = vector.shape_cast %10 : vector<1x8x4xbf16> to vector<8x4xbf16>
    %12 = arith.truncf %9 : vector<4x256xf32> to vector<4x256xbf16>
    %cst_12 = arith.constant dense<0.000000e+00> : vector<8x256xf32>
    %13 = tpu.matmul %11, %12, %cst_12 {dimension_numbers = #tpu.dot_dimension_numbers<[1], [0], [0], [1], [0, 0, 1, 1], [], []>} : vector<8x4xbf16>, vector<4x256xbf16>, vector<8x256xf32> -> vector<8x256xf32>
    %14 = arith.addf %4, %13 : vector<8x256xf32>
    %c16_i32 = arith.constant 16 : i32
    %15 = tpu.dynamic_rotate %1 by %c16_i32 dim 1 : vector<4x256xf32>, i32 -> vector<4x256xf32>
    %c1 = arith.constant 1 : index
    %c0_13 = arith.constant 0 : index
    %c0_14 = arith.constant 0 : index
    %16 = vector.load %arg2[%c1, %c0_13, %c0_14] : memref<9x1x256xf32, #tpu.memory_space<vmem>>, vector<1x1x256xf32>
    %17 = vector.shape_cast %16 : vector<1x1x256xf32> to vector<1x256xf32>
    %18 = vector.broadcast %17 : vector<1x256xf32> to vector<4x256xf32>
    %19 = arith.mulf %15, %18 : vector<4x256xf32>
    %c1_15 = arith.constant 1 : index
    %c0_16 = arith.constant 0 : index
    %c0_17 = arith.constant 0 : index
    %20 = vector.load %arg3[%c1_15, %c0_16, %c0_17] : memref<9x8x4xbf16, #tpu.memory_space<vmem>>, vector<1x8x4xbf16>
    %21 = vector.shape_cast %20 : vector<1x8x4xbf16> to vector<8x4xbf16>
    %22 = arith.truncf %19 : vector<4x256xf32> to vector<4x256xbf16>
    %cst_18 = arith.constant dense<0.000000e+00> : vector<8x256xf32>
    %23 = tpu.matmul %21, %22, %cst_18 {dimension_numbers = #tpu.dot_dimension_numbers<[1], [0], [0], [1], [0, 0, 1, 1], [], []>} : vector<8x4xbf16>, vector<4x256xbf16>, vector<8x256xf32> -> vector<8x256xf32>
    %24 = arith.addf %14, %23 : vector<8x256xf32>
    %c15_i32 = arith.constant 15 : i32
    %25 = tpu.dynamic_rotate %1 by %c15_i32 dim 1 : vector<4x256xf32>, i32 -> vector<4x256xf32>
    %c2 = arith.constant 2 : index
    %c0_19 = arith.constant 0 : index
    %c0_20 = arith.constant 0 : index
    %26 = vector.load %arg2[%c2, %c0_19, %c0_20] : memref<9x1x256xf32, #tpu.memory_space<vmem>>, vector<1x1x256xf32>
    %27 = vector.shape_cast %26 : vector<1x1x256xf32> to vector<1x256xf32>
    %28 = vector.broadcast %27 : vector<1x256xf32> to vector<4x256xf32>
    %29 = arith.mulf %25, %28 : vector<4x256xf32>
    %c2_21 = arith.constant 2 : index
    %c0_22 = arith.constant 0 : index
    %c0_23 = arith.constant 0 : index
    %30 = vector.load %arg3[%c2_21, %c0_22, %c0_23] : memref<9x8x4xbf16, #tpu.memory_space<vmem>>, vector<1x8x4xbf16>
    %31 = vector.shape_cast %30 : vector<1x8x4xbf16> to vector<8x4xbf16>
    %32 = arith.truncf %29 : vector<4x256xf32> to vector<4x256xbf16>
    %cst_24 = arith.constant dense<0.000000e+00> : vector<8x256xf32>
    %33 = tpu.matmul %31, %32, %cst_24 {dimension_numbers = #tpu.dot_dimension_numbers<[1], [0], [0], [1], [0, 0, 1, 1], [], []>} : vector<8x4xbf16>, vector<4x256xbf16>, vector<8x256xf32> -> vector<8x256xf32>
    %34 = arith.addf %24, %33 : vector<8x256xf32>
    %c1_i32 = arith.constant 1 : i32
    %35 = tpu.dynamic_rotate %1 by %c1_i32 dim 1 : vector<4x256xf32>, i32 -> vector<4x256xf32>
    %c3 = arith.constant 3 : index
    %c0_25 = arith.constant 0 : index
    %c0_26 = arith.constant 0 : index
    %36 = vector.load %arg2[%c3, %c0_25, %c0_26] : memref<9x1x256xf32, #tpu.memory_space<vmem>>, vector<1x1x256xf32>
    %37 = vector.shape_cast %36 : vector<1x1x256xf32> to vector<1x256xf32>
    %38 = vector.broadcast %37 : vector<1x256xf32> to vector<4x256xf32>
    %39 = arith.mulf %35, %38 : vector<4x256xf32>
    %c3_27 = arith.constant 3 : index
    %c0_28 = arith.constant 0 : index
    %c0_29 = arith.constant 0 : index
    %40 = vector.load %arg3[%c3_27, %c0_28, %c0_29] : memref<9x8x4xbf16, #tpu.memory_space<vmem>>, vector<1x8x4xbf16>
    %41 = vector.shape_cast %40 : vector<1x8x4xbf16> to vector<8x4xbf16>
    %42 = arith.truncf %39 : vector<4x256xf32> to vector<4x256xbf16>
    %cst_30 = arith.constant dense<0.000000e+00> : vector<8x256xf32>
    %43 = tpu.matmul %41, %42, %cst_30 {dimension_numbers = #tpu.dot_dimension_numbers<[1], [0], [0], [1], [0, 0, 1, 1], [], []>} : vector<8x4xbf16>, vector<4x256xbf16>, vector<8x256xf32> -> vector<8x256xf32>
    %44 = arith.addf %34, %43 : vector<8x256xf32>
    %c4 = arith.constant 4 : index
    %c0_31 = arith.constant 0 : index
    %c0_32 = arith.constant 0 : index
    %45 = vector.load %arg3[%c4, %c0_31, %c0_32] : memref<9x8x4xbf16, #tpu.memory_space<vmem>>, vector<1x8x4xbf16>
    %46 = vector.shape_cast %45 : vector<1x8x4xbf16> to vector<8x4xbf16>
    %47 = arith.truncf %1 : vector<4x256xf32> to vector<4x256xbf16>
    %cst_33 = arith.constant dense<0.000000e+00> : vector<8x256xf32>
    %48 = tpu.matmul %46, %47, %cst_33 {dimension_numbers = #tpu.dot_dimension_numbers<[1], [0], [0], [1], [0, 0, 1, 1], [], []>} : vector<8x4xbf16>, vector<4x256xbf16>, vector<8x256xf32> -> vector<8x256xf32>
    %49 = arith.addf %44, %48 : vector<8x256xf32>
    %c255_i32 = arith.constant 255 : i32
    %50 = tpu.dynamic_rotate %1 by %c255_i32 dim 1 : vector<4x256xf32>, i32 -> vector<4x256xf32>
    %c5 = arith.constant 5 : index
    %c0_34 = arith.constant 0 : index
    %c0_35 = arith.constant 0 : index
    %51 = vector.load %arg2[%c5, %c0_34, %c0_35] : memref<9x1x256xf32, #tpu.memory_space<vmem>>, vector<1x1x256xf32>
    %52 = vector.shape_cast %51 : vector<1x1x256xf32> to vector<1x256xf32>
    %53 = vector.broadcast %52 : vector<1x256xf32> to vector<4x256xf32>
    %54 = arith.mulf %50, %53 : vector<4x256xf32>
    %c5_36 = arith.constant 5 : index
    %c0_37 = arith.constant 0 : index
    %c0_38 = arith.constant 0 : index
    %55 = vector.load %arg3[%c5_36, %c0_37, %c0_38] : memref<9x8x4xbf16, #tpu.memory_space<vmem>>, vector<1x8x4xbf16>
    %56 = vector.shape_cast %55 : vector<1x8x4xbf16> to vector<8x4xbf16>
    %57 = arith.truncf %54 : vector<4x256xf32> to vector<4x256xbf16>
    %cst_39 = arith.constant dense<0.000000e+00> : vector<8x256xf32>
    %58 = tpu.matmul %56, %57, %cst_39 {dimension_numbers = #tpu.dot_dimension_numbers<[1], [0], [0], [1], [0, 0, 1, 1], [], []>} : vector<8x4xbf16>, vector<4x256xbf16>, vector<8x256xf32> -> vector<8x256xf32>
    %59 = arith.addf %49, %58 : vector<8x256xf32>
    %c241_i32 = arith.constant 241 : i32
    %60 = tpu.dynamic_rotate %1 by %c241_i32 dim 1 : vector<4x256xf32>, i32 -> vector<4x256xf32>
    %c6 = arith.constant 6 : index
    %c0_40 = arith.constant 0 : index
    %c0_41 = arith.constant 0 : index
    %61 = vector.load %arg2[%c6, %c0_40, %c0_41] : memref<9x1x256xf32, #tpu.memory_space<vmem>>, vector<1x1x256xf32>
    %62 = vector.shape_cast %61 : vector<1x1x256xf32> to vector<1x256xf32>
    %63 = vector.broadcast %62 : vector<1x256xf32> to vector<4x256xf32>
    %64 = arith.mulf %60, %63 : vector<4x256xf32>
    %c6_42 = arith.constant 6 : index
    %c0_43 = arith.constant 0 : index
    %c0_44 = arith.constant 0 : index
    %65 = vector.load %arg3[%c6_42, %c0_43, %c0_44] : memref<9x8x4xbf16, #tpu.memory_space<vmem>>, vector<1x8x4xbf16>
    %66 = vector.shape_cast %65 : vector<1x8x4xbf16> to vector<8x4xbf16>
    %67 = arith.truncf %64 : vector<4x256xf32> to vector<4x256xbf16>
    %cst_45 = arith.constant dense<0.000000e+00> : vector<8x256xf32>
    %68 = tpu.matmul %66, %67, %cst_45 {dimension_numbers = #tpu.dot_dimension_numbers<[1], [0], [0], [1], [0, 0, 1, 1], [], []>} : vector<8x4xbf16>, vector<4x256xbf16>, vector<8x256xf32> -> vector<8x256xf32>
    %69 = arith.addf %59, %68 : vector<8x256xf32>
    %c240_i32 = arith.constant 240 : i32
    %70 = tpu.dynamic_rotate %1 by %c240_i32 dim 1 : vector<4x256xf32>, i32 -> vector<4x256xf32>
    %c7 = arith.constant 7 : index
    %c0_46 = arith.constant 0 : index
    %c0_47 = arith.constant 0 : index
    %71 = vector.load %arg2[%c7, %c0_46, %c0_47] : memref<9x1x256xf32, #tpu.memory_space<vmem>>, vector<1x1x256xf32>
    %72 = vector.shape_cast %71 : vector<1x1x256xf32> to vector<1x256xf32>
    %73 = vector.broadcast %72 : vector<1x256xf32> to vector<4x256xf32>
    %74 = arith.mulf %70, %73 : vector<4x256xf32>
    %c7_48 = arith.constant 7 : index
    %c0_49 = arith.constant 0 : index
    %c0_50 = arith.constant 0 : index
    %75 = vector.load %arg3[%c7_48, %c0_49, %c0_50] : memref<9x8x4xbf16, #tpu.memory_space<vmem>>, vector<1x8x4xbf16>
    %76 = vector.shape_cast %75 : vector<1x8x4xbf16> to vector<8x4xbf16>
    %77 = arith.truncf %74 : vector<4x256xf32> to vector<4x256xbf16>
    %cst_51 = arith.constant dense<0.000000e+00> : vector<8x256xf32>
    %78 = tpu.matmul %76, %77, %cst_51 {dimension_numbers = #tpu.dot_dimension_numbers<[1], [0], [0], [1], [0, 0, 1, 1], [], []>} : vector<8x4xbf16>, vector<4x256xbf16>, vector<8x256xf32> -> vector<8x256xf32>
    %79 = arith.addf %69, %78 : vector<8x256xf32>
    %c239_i32 = arith.constant 239 : i32
    %80 = tpu.dynamic_rotate %1 by %c239_i32 dim 1 : vector<4x256xf32>, i32 -> vector<4x256xf32>
    %c8 = arith.constant 8 : index
    %c0_52 = arith.constant 0 : index
    %c0_53 = arith.constant 0 : index
    %81 = vector.load %arg2[%c8, %c0_52, %c0_53] : memref<9x1x256xf32, #tpu.memory_space<vmem>>, vector<1x1x256xf32>
    %82 = vector.shape_cast %81 : vector<1x1x256xf32> to vector<1x256xf32>
    %83 = vector.broadcast %82 : vector<1x256xf32> to vector<4x256xf32>
    %84 = arith.mulf %80, %83 : vector<4x256xf32>
    %c8_54 = arith.constant 8 : index
    %c0_55 = arith.constant 0 : index
    %c0_56 = arith.constant 0 : index
    %85 = vector.load %arg3[%c8_54, %c0_55, %c0_56] : memref<9x8x4xbf16, #tpu.memory_space<vmem>>, vector<1x8x4xbf16>
    %86 = vector.shape_cast %85 : vector<1x8x4xbf16> to vector<8x4xbf16>
    %87 = arith.truncf %84 : vector<4x256xf32> to vector<4x256xbf16>
    %cst_57 = arith.constant dense<0.000000e+00> : vector<8x256xf32>
    %88 = tpu.matmul %86, %87, %cst_57 {dimension_numbers = #tpu.dot_dimension_numbers<[1], [0], [0], [1], [0, 0, 1, 1], [], []>} : vector<8x4xbf16>, vector<4x256xbf16>, vector<8x256xf32> -> vector<8x256xf32>
    %89 = arith.addf %79, %88 : vector<8x256xf32>
    %90 = vector.broadcast %2 : vector<8x1xf32> to vector<8x256xf32>
    %91 = arith.mulf %89, %90 : vector<8x256xf32>
    %92 = vector.broadcast %3 : vector<8x1xf32> to vector<8x256xf32>
    %93 = arith.addf %91, %92 : vector<8x256xf32>
    %cst_58 = arith.constant 0.000000e+00 : f32
    %94 = vector.broadcast %cst_58 : f32 to vector<8x256xf32>
    %95 = arith.maximumf %93, %94 : vector<8x256xf32>
    %c0_59 = arith.constant 0 : index
    %c0_60 = arith.constant 0 : index
    %96 = vector.load %arg7[%c0_59, %c0_60] : memref<8x1xf32, #tpu.memory_space<vmem>>, vector<8x1xf32>
    %c0_61 = arith.constant 0 : index
    %c0_62 = arith.constant 0 : index
    %97 = vector.load %arg8[%c0_61, %c0_62] : memref<8x1xf32, #tpu.memory_space<vmem>>, vector<8x1xf32>
    %cst_63 = arith.constant 0.000000e+00 : f32
    %98 = vector.broadcast %cst_63 : f32 to vector<8x256xf32>
    %c17_i32_64 = arith.constant 17 : i32
    %99 = tpu.dynamic_rotate %95 by %c17_i32_64 dim 1 : vector<8x256xf32>, i32 -> vector<8x256xf32>
    %c0_65 = arith.constant 0 : index
    %c0_66 = arith.constant 0 : index
    %c0_67 = arith.constant 0 : index
    %100 = vector.load %arg2[%c0_65, %c0_66, %c0_67] : memref<9x1x256xf32, #tpu.memory_space<vmem>>, vector<1x1x256xf32>
    %101 = vector.shape_cast %100 : vector<1x1x256xf32> to vector<1x256xf32>
    %102 = vector.broadcast %101 : vector<1x256xf32> to vector<8x256xf32>
    %103 = arith.mulf %99, %102 : vector<8x256xf32>
    %c0_68 = arith.constant 0 : index
    %c0_69 = arith.constant 0 : index
    %c0_70 = arith.constant 0 : index
    %104 = vector.load %arg6[%c0_68, %c0_69, %c0_70] : memref<9x8x8xbf16, #tpu.memory_space<vmem>>, vector<1x8x8xbf16>
    %105 = vector.shape_cast %104 : vector<1x8x8xbf16> to vector<8x8xbf16>
    %106 = arith.truncf %103 : vector<8x256xf32> to vector<8x256xbf16>
    %cst_71 = arith.constant dense<0.000000e+00> : vector<8x256xf32>
    %107 = tpu.matmul %105, %106, %cst_71 {dimension_numbers = #tpu.dot_dimension_numbers<[1], [0], [0], [1], [0, 0, 1, 1], [], []>} : vector<8x8xbf16>, vector<8x256xbf16>, vector<8x256xf32> -> vector<8x256xf32>
    %108 = arith.addf %98, %107 : vector<8x256xf32>
    %c16_i32_72 = arith.constant 16 : i32
    %109 = tpu.dynamic_rotate %95 by %c16_i32_72 dim 1 : vector<8x256xf32>, i32 -> vector<8x256xf32>
    %c1_73 = arith.constant 1 : index
    %c0_74 = arith.constant 0 : index
    %c0_75 = arith.constant 0 : index
    %110 = vector.load %arg2[%c1_73, %c0_74, %c0_75] : memref<9x1x256xf32, #tpu.memory_space<vmem>>, vector<1x1x256xf32>
    %111 = vector.shape_cast %110 : vector<1x1x256xf32> to vector<1x256xf32>
    %112 = vector.broadcast %111 : vector<1x256xf32> to vector<8x256xf32>
    %113 = arith.mulf %109, %112 : vector<8x256xf32>
    %c1_76 = arith.constant 1 : index
    %c0_77 = arith.constant 0 : index
    %c0_78 = arith.constant 0 : index
    %114 = vector.load %arg6[%c1_76, %c0_77, %c0_78] : memref<9x8x8xbf16, #tpu.memory_space<vmem>>, vector<1x8x8xbf16>
    %115 = vector.shape_cast %114 : vector<1x8x8xbf16> to vector<8x8xbf16>
    %116 = arith.truncf %113 : vector<8x256xf32> to vector<8x256xbf16>
    %cst_79 = arith.constant dense<0.000000e+00> : vector<8x256xf32>
    %117 = tpu.matmul %115, %116, %cst_79 {dimension_numbers = #tpu.dot_dimension_numbers<[1], [0], [0], [1], [0, 0, 1, 1], [], []>} : vector<8x8xbf16>, vector<8x256xbf16>, vector<8x256xf32> -> vector<8x256xf32>
    %118 = arith.addf %108, %117 : vector<8x256xf32>
    %c15_i32_80 = arith.constant 15 : i32
    %119 = tpu.dynamic_rotate %95 by %c15_i32_80 dim 1 : vector<8x256xf32>, i32 -> vector<8x256xf32>
    %c2_81 = arith.constant 2 : index
    %c0_82 = arith.constant 0 : index
    %c0_83 = arith.constant 0 : index
    %120 = vector.load %arg2[%c2_81, %c0_82, %c0_83] : memref<9x1x256xf32, #tpu.memory_space<vmem>>, vector<1x1x256xf32>
    %121 = vector.shape_cast %120 : vector<1x1x256xf32> to vector<1x256xf32>
    %122 = vector.broadcast %121 : vector<1x256xf32> to vector<8x256xf32>
    %123 = arith.mulf %119, %122 : vector<8x256xf32>
    %c2_84 = arith.constant 2 : index
    %c0_85 = arith.constant 0 : index
    %c0_86 = arith.constant 0 : index
    %124 = vector.load %arg6[%c2_84, %c0_85, %c0_86] : memref<9x8x8xbf16, #tpu.memory_space<vmem>>, vector<1x8x8xbf16>
    %125 = vector.shape_cast %124 : vector<1x8x8xbf16> to vector<8x8xbf16>
    %126 = arith.truncf %123 : vector<8x256xf32> to vector<8x256xbf16>
    %cst_87 = arith.constant dense<0.000000e+00> : vector<8x256xf32>
    %127 = tpu.matmul %125, %126, %cst_87 {dimension_numbers = #tpu.dot_dimension_numbers<[1], [0], [0], [1], [0, 0, 1, 1], [], []>} : vector<8x8xbf16>, vector<8x256xbf16>, vector<8x256xf32> -> vector<8x256xf32>
    %128 = arith.addf %118, %127 : vector<8x256xf32>
    %c1_i32_88 = arith.constant 1 : i32
    %129 = tpu.dynamic_rotate %95 by %c1_i32_88 dim 1 : vector<8x256xf32>, i32 -> vector<8x256xf32>
    %c3_89 = arith.constant 3 : index
    %c0_90 = arith.constant 0 : index
    %c0_91 = arith.constant 0 : index
    %130 = vector.load %arg2[%c3_89, %c0_90, %c0_91] : memref<9x1x256xf32, #tpu.memory_space<vmem>>, vector<1x1x256xf32>
    %131 = vector.shape_cast %130 : vector<1x1x256xf32> to vector<1x256xf32>
    %132 = vector.broadcast %131 : vector<1x256xf32> to vector<8x256xf32>
    %133 = arith.mulf %129, %132 : vector<8x256xf32>
    %c3_92 = arith.constant 3 : index
    %c0_93 = arith.constant 0 : index
    %c0_94 = arith.constant 0 : index
    %134 = vector.load %arg6[%c3_92, %c0_93, %c0_94] : memref<9x8x8xbf16, #tpu.memory_space<vmem>>, vector<1x8x8xbf16>
    %135 = vector.shape_cast %134 : vector<1x8x8xbf16> to vector<8x8xbf16>
    %136 = arith.truncf %133 : vector<8x256xf32> to vector<8x256xbf16>
    %cst_95 = arith.constant dense<0.000000e+00> : vector<8x256xf32>
    %137 = tpu.matmul %135, %136, %cst_95 {dimension_numbers = #tpu.dot_dimension_numbers<[1], [0], [0], [1], [0, 0, 1, 1], [], []>} : vector<8x8xbf16>, vector<8x256xbf16>, vector<8x256xf32> -> vector<8x256xf32>
    %138 = arith.addf %128, %137 : vector<8x256xf32>
    %c4_96 = arith.constant 4 : index
    %c0_97 = arith.constant 0 : index
    %c0_98 = arith.constant 0 : index
    %139 = vector.load %arg6[%c4_96, %c0_97, %c0_98] : memref<9x8x8xbf16, #tpu.memory_space<vmem>>, vector<1x8x8xbf16>
    %140 = vector.shape_cast %139 : vector<1x8x8xbf16> to vector<8x8xbf16>
    %141 = arith.truncf %95 : vector<8x256xf32> to vector<8x256xbf16>
    %cst_99 = arith.constant dense<0.000000e+00> : vector<8x256xf32>
    %142 = tpu.matmul %140, %141, %cst_99 {dimension_numbers = #tpu.dot_dimension_numbers<[1], [0], [0], [1], [0, 0, 1, 1], [], []>} : vector<8x8xbf16>, vector<8x256xbf16>, vector<8x256xf32> -> vector<8x256xf32>
    %143 = arith.addf %138, %142 : vector<8x256xf32>
    %c255_i32_100 = arith.constant 255 : i32
    %144 = tpu.dynamic_rotate %95 by %c255_i32_100 dim 1 : vector<8x256xf32>, i32 -> vector<8x256xf32>
    %c5_101 = arith.constant 5 : index
    %c0_102 = arith.constant 0 : index
    %c0_103 = arith.constant 0 : index
    %145 = vector.load %arg2[%c5_101, %c0_102, %c0_103] : memref<9x1x256xf32, #tpu.memory_space<vmem>>, vector<1x1x256xf32>
    %146 = vector.shape_cast %145 : vector<1x1x256xf32> to vector<1x256xf32>
    %147 = vector.broadcast %146 : vector<1x256xf32> to vector<8x256xf32>
    %148 = arith.mulf %144, %147 : vector<8x256xf32>
    %c5_104 = arith.constant 5 : index
    %c0_105 = arith.constant 0 : index
    %c0_106 = arith.constant 0 : index
    %149 = vector.load %arg6[%c5_104, %c0_105, %c0_106] : memref<9x8x8xbf16, #tpu.memory_space<vmem>>, vector<1x8x8xbf16>
    %150 = vector.shape_cast %149 : vector<1x8x8xbf16> to vector<8x8xbf16>
    %151 = arith.truncf %148 : vector<8x256xf32> to vector<8x256xbf16>
    %cst_107 = arith.constant dense<0.000000e+00> : vector<8x256xf32>
    %152 = tpu.matmul %150, %151, %cst_107 {dimension_numbers = #tpu.dot_dimension_numbers<[1], [0], [0], [1], [0, 0, 1, 1], [], []>} : vector<8x8xbf16>, vector<8x256xbf16>, vector<8x256xf32> -> vector<8x256xf32>
    %153 = arith.addf %143, %152 : vector<8x256xf32>
    %c241_i32_108 = arith.constant 241 : i32
    %154 = tpu.dynamic_rotate %95 by %c241_i32_108 dim 1 : vector<8x256xf32>, i32 -> vector<8x256xf32>
    %c6_109 = arith.constant 6 : index
    %c0_110 = arith.constant 0 : index
    %c0_111 = arith.constant 0 : index
    %155 = vector.load %arg2[%c6_109, %c0_110, %c0_111] : memref<9x1x256xf32, #tpu.memory_space<vmem>>, vector<1x1x256xf32>
    %156 = vector.shape_cast %155 : vector<1x1x256xf32> to vector<1x256xf32>
    %157 = vector.broadcast %156 : vector<1x256xf32> to vector<8x256xf32>
    %158 = arith.mulf %154, %157 : vector<8x256xf32>
    %c6_112 = arith.constant 6 : index
    %c0_113 = arith.constant 0 : index
    %c0_114 = arith.constant 0 : index
    %159 = vector.load %arg6[%c6_112, %c0_113, %c0_114] : memref<9x8x8xbf16, #tpu.memory_space<vmem>>, vector<1x8x8xbf16>
    %160 = vector.shape_cast %159 : vector<1x8x8xbf16> to vector<8x8xbf16>
    %161 = arith.truncf %158 : vector<8x256xf32> to vector<8x256xbf16>
    %cst_115 = arith.constant dense<0.000000e+00> : vector<8x256xf32>
    %162 = tpu.matmul %160, %161, %cst_115 {dimension_numbers = #tpu.dot_dimension_numbers<[1], [0], [0], [1], [0, 0, 1, 1], [], []>} : vector<8x8xbf16>, vector<8x256xbf16>, vector<8x256xf32> -> vector<8x256xf32>
    %163 = arith.addf %153, %162 : vector<8x256xf32>
    %c240_i32_116 = arith.constant 240 : i32
    %164 = tpu.dynamic_rotate %95 by %c240_i32_116 dim 1 : vector<8x256xf32>, i32 -> vector<8x256xf32>
    %c7_117 = arith.constant 7 : index
    %c0_118 = arith.constant 0 : index
    %c0_119 = arith.constant 0 : index
    %165 = vector.load %arg2[%c7_117, %c0_118, %c0_119] : memref<9x1x256xf32, #tpu.memory_space<vmem>>, vector<1x1x256xf32>
    %166 = vector.shape_cast %165 : vector<1x1x256xf32> to vector<1x256xf32>
    %167 = vector.broadcast %166 : vector<1x256xf32> to vector<8x256xf32>
    %168 = arith.mulf %164, %167 : vector<8x256xf32>
    %c7_120 = arith.constant 7 : index
    %c0_121 = arith.constant 0 : index
    %c0_122 = arith.constant 0 : index
    %169 = vector.load %arg6[%c7_120, %c0_121, %c0_122] : memref<9x8x8xbf16, #tpu.memory_space<vmem>>, vector<1x8x8xbf16>
    %170 = vector.shape_cast %169 : vector<1x8x8xbf16> to vector<8x8xbf16>
    %171 = arith.truncf %168 : vector<8x256xf32> to vector<8x256xbf16>
    %cst_123 = arith.constant dense<0.000000e+00> : vector<8x256xf32>
    %172 = tpu.matmul %170, %171, %cst_123 {dimension_numbers = #tpu.dot_dimension_numbers<[1], [0], [0], [1], [0, 0, 1, 1], [], []>} : vector<8x8xbf16>, vector<8x256xbf16>, vector<8x256xf32> -> vector<8x256xf32>
    %173 = arith.addf %163, %172 : vector<8x256xf32>
    %c239_i32_124 = arith.constant 239 : i32
    %174 = tpu.dynamic_rotate %95 by %c239_i32_124 dim 1 : vector<8x256xf32>, i32 -> vector<8x256xf32>
    %c8_125 = arith.constant 8 : index
    %c0_126 = arith.constant 0 : index
    %c0_127 = arith.constant 0 : index
    %175 = vector.load %arg2[%c8_125, %c0_126, %c0_127] : memref<9x1x256xf32, #tpu.memory_space<vmem>>, vector<1x1x256xf32>
    %176 = vector.shape_cast %175 : vector<1x1x256xf32> to vector<1x256xf32>
    %177 = vector.broadcast %176 : vector<1x256xf32> to vector<8x256xf32>
    %178 = arith.mulf %174, %177 : vector<8x256xf32>
    %c8_128 = arith.constant 8 : index
    %c0_129 = arith.constant 0 : index
    %c0_130 = arith.constant 0 : index
    %179 = vector.load %arg6[%c8_128, %c0_129, %c0_130] : memref<9x8x8xbf16, #tpu.memory_space<vmem>>, vector<1x8x8xbf16>
    %180 = vector.shape_cast %179 : vector<1x8x8xbf16> to vector<8x8xbf16>
    %181 = arith.truncf %178 : vector<8x256xf32> to vector<8x256xbf16>
    %cst_131 = arith.constant dense<0.000000e+00> : vector<8x256xf32>
    %182 = tpu.matmul %180, %181, %cst_131 {dimension_numbers = #tpu.dot_dimension_numbers<[1], [0], [0], [1], [0, 0, 1, 1], [], []>} : vector<8x8xbf16>, vector<8x256xbf16>, vector<8x256xf32> -> vector<8x256xf32>
    %183 = arith.addf %173, %182 : vector<8x256xf32>
    %184 = vector.broadcast %96 : vector<8x1xf32> to vector<8x256xf32>
    %185 = arith.mulf %183, %184 : vector<8x256xf32>
    %186 = vector.broadcast %97 : vector<8x1xf32> to vector<8x256xf32>
    %187 = arith.addf %185, %186 : vector<8x256xf32>
    %cst_132 = arith.constant 0.000000e+00 : f32
    %188 = vector.broadcast %cst_132 : f32 to vector<8x256xf32>
    %189 = arith.maximumf %187, %188 : vector<8x256xf32>
    %c0_133 = arith.constant 0 : index
    %c0_134 = arith.constant 0 : index
    %c0_135 = arith.constant 0 : index
    %190 = vector.load %arg9[%c0_133, %c0_134, %c0_135] : memref<1x8x256xf32, #tpu.memory_space<vmem>>, vector<1x8x256xf32>
    %191 = vector.shape_cast %190 : vector<1x8x256xf32> to vector<8x256xf32>
    %192 = vector.shape_cast %189 : vector<8x256xf32> to vector<1x8x256xf32>
    tpu.vector_store %arg9[%c0_133, %c0_134, %c0_135], %192 {strides = array<i32>} : memref<1x8x256xf32, #tpu.memory_space<vmem>>, vector<1x8x256xf32>,
    return
  }
  func.func @transform_0(%arg0: i32) -> (i32, i32, i32) {
    %c0_i32 = arith.constant 0 : i32
    %c0_i32_0 = arith.constant 0 : i32
    %c0_i32_1 = arith.constant 0 : i32
    return %arg0, %c0_i32, %c0_i32_0 : i32, i32, i32
  }
  func.func @transform_1(%arg0: i32) -> (i32, i32, i32) {
    %c0_i32 = arith.constant 0 : i32
    %c0_i32_0 = arith.constant 0 : i32
    %c0_i32_1 = arith.constant 0 : i32
    %c0_i32_2 = arith.constant 0 : i32
    return %c0_i32, %c0_i32_0, %c0_i32_1 : i32, i32, i32
  }
  func.func @transform_2(%arg0: i32) -> (i32, i32, i32) {
    %c0_i32 = arith.constant 0 : i32
    %c0_i32_0 = arith.constant 0 : i32
    %c0_i32_1 = arith.constant 0 : i32
    %c0_i32_2 = arith.constant 0 : i32
    return %c0_i32, %c0_i32_0, %c0_i32_1 : i32, i32, i32
  }
  func.func @transform_3(%arg0: i32) -> (i32, i32) {
    %c0_i32 = arith.constant 0 : i32
    %c0_i32_0 = arith.constant 0 : i32
    %c0_i32_1 = arith.constant 0 : i32
    return %c0_i32, %c0_i32_0 : i32, i32
  }
  func.func @transform_4(%arg0: i32) -> (i32, i32) {
    %c0_i32 = arith.constant 0 : i32
    %c0_i32_0 = arith.constant 0 : i32
    %c0_i32_1 = arith.constant 0 : i32
    return %c0_i32, %c0_i32_0 : i32, i32
  }
  func.func @transform_5(%arg0: i32) -> (i32, i32, i32) {
    %c0_i32 = arith.constant 0 : i32
    %c0_i32_0 = arith.constant 0 : i32
    %c0_i32_1 = arith.constant 0 : i32
    %c0_i32_2 = arith.constant 0 : i32
    return %c0_i32, %c0_i32_0, %c0_i32_1 : i32, i32, i32
  }
  func.func @transform_6(%arg0: i32) -> (i32, i32) {
    %c0_i32 = arith.constant 0 : i32
    %c0_i32_0 = arith.constant 0 : i32
    %c0_i32_1 = arith.constant 0 : i32
    return %c0_i32, %c0_i32_0 : i32, i32
  }
  func.func @transform_7(%arg0: i32) -> (i32, i32) {
    %c0_i32 = arith.constant 0 : i32
    %c0_i32_0 = arith.constant 0 : i32
    %c0_i32_1 = arith.constant 0 : i32
    return %c0_i32, %c0_i32_0 : i32, i32
  }
  func.func @transform_8(%arg0: i32) -> (i32, i32, i32) {
    %c0_i32 = arith.constant 0 : i32
    %c0_i32_0 = arith.constant 0 : i32
    %c0_i32_1 = arith.constant 0 : i32
    return %arg0, %c0_i32, %c0_i32_0 : i32, i32, i32
  }
}

</mosaic_0001>

<bundles_post_ra>
// kernel: double_conv.1
= control target key start
LH: loop header
LB: loop body
LE: loop exit
PB: predicated region body
PF: predicated region fallthrough
CT: control target
= control target key end

     0   :  { %s1865_s27 = smov 0   ;;  %s2290_s0 = inlined_call_operand.vmem [shape: f32[2,4,256], index: 0, kind: input, shape index: {}]   ;;  %s2291_s1 = inlined_call_operand.vmem [shape: f32[9,1,256], index: 1, kind: input, shape index: {}]   ;;  %s2292_s2 = inlined_call_operand.vmem [shape: bf16[9,8,4], index: 2, kind: input, shape index: {}]   ;;  %s2293_s3 = inlined_call_operand.vmem [shape: f32[8,1], index: 3, kind: input, shape index: {}]   ;;  %s2294_s4 = inlined_call_operand.vmem [shape: f32[8,1], index: 4, kind: input, shape index: {}]   ;;  %s2295_s5 = inlined_call_operand.vmem [shape: bf16[9,8,8], index: 5, kind: input, shape index: {}]   ;;  %s2296_s6 = inlined_call_operand.vmem [shape: f32[8,1], index: 6, kind: input, shape index: {}]   ;;  %s2297_s7 = inlined_call_operand.vmem [shape: f32[8,1], index: 7, kind: input, shape index: {}]   ;;  %s2298_s8 = inlined_call_operand.vmem [shape: f32[2,8,256], index: 8, kind: output, shape index: {}]  }
   0x1 LB: > { %s1647_s28 = sadd.s32 4294967295, %s1809_s27   ;;  %p1651_p0 = scmp.ge.s32.totalorder %s1809_s27, 1  ;;  %s1809_s27 = sphi %s1865_s27, %s18_s27  }
   0x2   : > { %p262_p1 = scmp.lt.s32.totalorder %s1809_s27, 3 }
   0x4   : > { %p263_p2 = pnand %p1651_p0, %p262_p1 }
   0x5   : > { %p296_p3 = scmp.lt.s32.totalorder (!%p263_p2), %s1647_s28, 1  ;;  %v1811_v1 = vmov (!%p263_p2), 0   ;;  %s1812_s11 = smov (!%p263_p2), 17   ;;  %v308_v3 = vld [vmem:[%s2293_s3] sm:$0xff] (!%p263_p2)  ;;  %v317_v5 = vlaneseq (!%p263_p2)  ;;  %vm369_vm3 = vcmask (!%p263_p2), 1041408   ;;  %vm365_vm4 = vcmask (!%p263_p2), 31744  }
   0x6   : > { %266 = sbr.rel (%p263_p2) target bundleno = 900 (0x384), region = 52  ;;  %408 = vmatprep.mubr.bf16.mxu0 (!%p263_p2), %v1811_v1  ;;  %s1813_s12 = smov (!%p263_p2), 16   ;;  %1800 = vset.pattern.permute.xlu0 (!%p263_p2), %v1811_v1  ;;  %v309_v4 = vld [vmem:[%s2294_s4] sm:$0xff] (!%p263_p2)  ;;  %v1663_v59 = vld [vmem:[%s2292_s2 + $0x8] sm:$0xf] (!%p263_p2)  ;;  %vm1036_vm10 = vcmask (!%p263_p2), 1043456  }
   0x7   : > { %1801 = vset.pattern.permute.xlu1 (!%p263_p2), %v1811_v1  ;;  %1075 = vmatprep.mubr.bf16.mxu1 (!%p263_p2), %v1811_v1  ;;  %s1814_s13 = smov (!%p263_p2), 15   ;;  %s1815_s14 = smov (!%p263_p2), 1   ;;  %v325_v6 = vshrl.u32 (!%p263_p2), %v317_v5, 7  ;;  %v1927_v7 = vand.u32 (!%p263_p2), 127, %v317_v5  ;;  %v322_v10 = vld [vmem:[%s2291_s1] sm:$0x3] (!%p263_p2) }
   0x8   : > { %s1816_s15 = smov (!%p263_p2), 127   ;;  %s1817_s16 = smov (!%p263_p2), 113   ;;  %v1656_v11 = vld [vmem:[%s2291_s1 + $0x2] sm:$0x3] (!%p263_p2)  ;;  %v1662_v14 = vld [vmem:[%s2291_s1 + $0x4] sm:$0x3] (!%p263_p2) }
   0x9   : > { %s1818_s17 = smov (!%p263_p2), 112   ;;  %s1819_s18 = smov (!%p263_p2), 111   ;;  %v1929_v8 = vsub.s32 (!%p263_p2), 0, %v325_v6  ;;  %v1931_v9 = vsub.s32 (!%p263_p2), 1, %v325_v6  ;;  %vm319_vm0 = vcmp.lt.s32.totalorder (!%p263_p2), %v1927_v7, 17  ;;  %vm343_vm1 = vcmp.lt.s32.totalorder (!%p263_p2), %v1927_v7, 16 }
   0xa   : > { %vm471_vm2 = vcmp.lt.s32.totalorder (!%p263_p2), %v1927_v7, 15  ;;  %v1657_v39 = vld [vmem:[%s2292_s2 + $0x4] sm:$0xf] (!%p263_p2)  ;;  %vm549_vm5 = vcmp.lt.s32.totalorder (!%p263_p2), %v1927_v7, 1  ;;  %v336_v52 = vld [vmem:[%s2292_s2] sm:$0xf] (!%p263_p2) }
   0xb   : > { %v1945_v15 = vrot.slane (!%p263_p2), %v322_v10, %v1929_v8  ;;  %v1948_v16 = vrot.slane (!%p263_p2), %v322_v10, %v1931_v9  ;;  %v1951_v17 = vrot.slane (!%p263_p2), %v1656_v11, %v1929_v8  ;;  %v1954_v18 = vrot.slane (!%p263_p2), %v1656_v11, %v1931_v9  ;;  %v1666_v44 = vld [vmem:[%s2291_s1 + $0x6] sm:$0x3] (!%p263_p2)  ;;  %v1673_v62 = vld [vmem:[%s2291_s1 + $0xa] sm:$0x3] (!%p263_p2)  ;;  %v1667_v10 = vld [vmem:[%s2292_s2 + $0xc] sm:$0xf] (!%p263_p2) }
   0xc   : > { %v1958_v21 = vrot.slane (!%p263_p2), %v1662_v14, %v1931_v9  ;;  %v1983_v41 = vrot.slane (!%p263_p2), %v1662_v14, %v1929_v8  ;;  %v1996_v48 = vrot.slane (!%p263_p2), %v1666_v44, %v1931_v9  ;;  %v2006_v54 = vrot.slane (!%p263_p2), %v1666_v44, %v1929_v8 }
   0xd   : > { %s2300_s28 = smov (!%p296_p3, %s1647_s28), 1  ;;  %vm683_vm6 = vcmp.lt.s32.totalorder %v1927_v7, 127  ;;  %vm761_vm7 = vcmp.lt.s32.totalorder %v1927_v7, 113  ;;  %vm839_vm8 = vcmp.lt.s32.totalorder %v1927_v7, 112  ;;  %vm917_vm9 = vcmp.lt.s32.totalorder %v1927_v7, 111 }
   0xe   : > { %s1717_s29 = sshll.u32 %s2300_s28, 3  ;;  %vm1032_vm11 = vcmask 64512   ;;  %v1712_v7 = vld [vmem:[%s2295_s5 + $0x20] sm:$0xf] }
   0xf   : > { %s300_s10 = scalar_lea.vmem %s2290_s0, %s1717_s29 }
  0x10   : > { %v1879_v0 = vld [vmem:[%s300_s10] sm:$0xff] }
  0x11   : > { %313 = vrot.lane.b32.xlu1 %v1879_v0, %s1812_s11  ;;  %339 = vrot.lane.b32.xlu0 %v1879_v0, %s1813_s12  ;;  %v1888_v2 = vcombine.high %v1879_v0, %v1879_v0  ;;  %v625_v5 = vpack.c.bf16 %v1879_v0, %v1879_v0 }
  0x13   : > { %v626_v61 = vpack.c.bf16 %v1888_v2, %v1888_v2  ;;  %v631_v11 = vsel %vm369_vm3, %v625_v5, 0 }
  0x15   : > { %315 = vrot.lane.b32.xlu1 %v1888_v2, %s1812_s11  ;;  %341 = vrot.lane.b32.xlu0 %v1888_v2, %s1813_s12 }
  0x19   : > { %469 = vrot.lane.b32.xlu1 %v1888_v2, %s1814_s13  ;;  %467 = vrot.lane.b32.xlu0 %v1879_v0, %s1814_s13 }
  0x1d   : > { %547 = vrot.lane.b32.xlu1 %v1888_v2, %s1815_s14  ;;  %545 = vrot.lane.b32.xlu0 %v1879_v0, %s1815_s14 }
  0x21   : > { %681 = vrot.lane.b32.xlu1 %v1888_v2, %s1816_s15  ;;  %679 = vrot.lane.b32.xlu0 %v1879_v0, %s1816_s15 }
  0x25   : > { %759 = vrot.lane.b32.xlu1 %v1888_v2, %s1817_s16  ;;  %757 = vrot.lane.b32.xlu0 %v1879_v0, %s1817_s16 }
  0x29   : > { %837 = vrot.lane.b32.xlu1 %v1888_v2, %s1818_s17  ;;  %835 = vrot.lane.b32.xlu0 %v1879_v0, %s1818_s17 }
  0x2d   : > { %915 = vrot.lane.b32.xlu1 %v1888_v2, %s1819_s18  ;;  %913 = vrot.lane.b32.xlu0 %v1879_v0, %s1819_s18 }
  0x31   : > { %993 = vperm.xlu0 %1800, %v308_v3   ;;  %1000 = vperm.xlu1 %1801, %v309_v4   ;;  %v2028_v4 = vrot.slane %v1673_v62, %v1931_v9 }
  0x83   : > { %v314_v12 = vpop.permute.xlu1 %313  ;;  %v340_v13 = vpop.permute.xlu0 %339 }
  0x87   : > { %v316_v19 = vpop.permute.xlu1 %315  ;;  %v342_v20 = vpop.permute.xlu0 %341 }
  0x88   : > { %v320_v22 = vsel %vm319_vm0, %v314_v12, %v316_v19  ;;  %v321_v23 = vsel %vm319_vm0, %v316_v19, %v314_v12  ;;  %v344_v24 = vsel %vm343_vm1, %v340_v13, %v342_v20  ;;  %v345_v25 = vsel %vm343_vm1, %v342_v20, %v340_v13  ;;  %v1677_v19 = vld [vmem:[%s2291_s1 + $0xc] sm:$0x3] }
  0x89   : > { %v334_v26 = vmul.f32 %v1945_v15, %v321_v23  ;;  %v335_v27 = vmul.f32 %v1948_v16, %v320_v22  ;;  %v359_v28 = vmul.f32 %v1951_v17, %v345_v25  ;;  %v360_v29 = vmul.f32 %v1954_v18, %v344_v24 }
  0x8a   : > { %v2040_v12 = vrot.slane %v1673_v62, %v1929_v8  ;;  %v2053_v23 = vrot.slane %v1677_v19, %v1931_v9  ;;  %v1682_v62 = vld [vmem:[%s2292_s2 + $0x1c] sm:$0xf] }
  0x8b   : > { %v337_v30 = vpack.c.bf16 %v334_v26, %v334_v26  ;;  %v338_v31 = vpack.c.bf16 %v335_v27, %v335_v27  ;;  %v364_v32 = vpack.c.bf16 %v360_v29, %v360_v29  ;;  %v363_v33 = vpack.c.bf16 %v359_v28, %v359_v28  ;;  %v470_v34 = vpop.permute.xlu1 %469  ;;  %v468_v35 = vpop.permute.xlu0 %467  ;;  %v1670_v27 = vld [vmem:[%s2292_s2 + $0x10] sm:$0xf] }
  0x8c   : > { %v472_v36 = vsel %vm471_vm2, %v468_v35, %v470_v34  ;;  %v473_v43 = vsel %vm471_vm2, %v470_v34, %v468_v35  ;;  %v2063_v29 = vrot.slane %v1677_v19, %v1929_v8 }
  0x8d   : > { %1658 = vmatprep.subr.msk.bf16.mxu0 %vm369_vm3, %v364_v32  ;;  %v371_v37 = vsel %vm369_vm3, %v363_v33, 0  ;;  %v488_v38 = vmul.f32 %v1958_v21, %v472_v36  ;;  %v421_v40 = vsel %vm369_vm3, %v337_v30, 0  ;;  %v487_v47 = vmul.f32 %v1983_v41, %v473_v43  ;;  %v1681_v32 = vld [vmem:[%s2291_s1 + $0xe] sm:$0x3] }
  0x8e   : > { %377 = vmatpush1.bf16.msra.mxu0 %v371_v37  ;;  %v2076_v36 = vrot.slane %v1681_v32, %v1931_v9  ;;  %v2086_v43 = vrot.slane %v1681_v32, %v1929_v8 }
  0x8f   : > { %1660 = vmatprep.subr.msk.bf16.mxu0 %vm369_vm3, %v338_v31  ;;  %v492_v42 = vpack.c.bf16 %v488_v38, %v488_v38  ;;  %v548_v45 = vpop.permute.xlu1 %547  ;;  %v546_v46 = vpop.permute.xlu0 %545  ;;  %v491_v50 = vpack.c.bf16 %v487_v47, %v487_v47 }
  0x90   : > { %v550_v49 = vsel %vm549_vm5, %v546_v46, %v548_v45  ;;  %v551_v56 = vsel %vm549_vm5, %v548_v45, %v546_v46  ;;  %v1685_v46 = vld [vmem:[%s2291_s1 + $0x10] sm:$0x3] }
  0x91   : > { %1659 = vmatmul.mubr.msk.bf16.vlgmr.msra.gmra.mrb[0].mxu0 %vm365_vm4, %v1657_v39  ;;  %v566_v51 = vmul.f32 %v1996_v48, %v550_v49  ;;  %v497_v53 = vsel %vm369_vm3, %v491_v50, 0  ;;  %v565_v57 = vmul.f32 %v2006_v54, %v551_v56  ;;  %v1678_v56 = vld [vmem:[%s2292_s2 + $0x18] sm:$0xf] }
  0x92   : > { %427 = vmatpush1.bf16.msra.mxu0 %v421_v40  ;;  %458 = vmatprep.mubr.bf16.mxu0 %v1811_v1  ;;  %v1674_v40 = vld [vmem:[%s2292_s2 + $0x14] sm:$0xf] }
  0x93   : > { %1664 = vmatprep.subr.msk.bf16.mxu0 %vm369_vm3, %v492_v42  ;;  %v570_v55 = vpack.c.bf16 %v566_v51, %v566_v51  ;;  %v569_v58 = vpack.c.bf16 %v565_v57, %v565_v57  ;;  %v682_v63 = vpop.permute.xlu1 %681  ;;  %v680_v3 = vpop.permute.xlu0 %679  ;;  %v2099_v51 = vrot.slane %v1685_v46, %v1931_v9 }
  0x94   : > { %v685_v2 = vsel %vm683_vm6, %v682_v63, %v680_v3  ;;  %v684_v14 = vsel %vm683_vm6, %v680_v3, %v682_v63  ;;  %v1686_v63 = vld [vmem:[%s2292_s2 + $0x20] sm:$0xf] }
  0x95   : > { %v575_v60 = vsel %vm369_vm3, %v569_v58, 0  ;;  %v700_v6 = vmul.f32 %v2028_v4, %v685_v2  ;;  %v699_v22 = vmul.f32 %v2040_v12, %v684_v14  ;;  %v2109_v58 = vrot.slane %v1685_v46, %v1929_v8 }
  0x97   : > { %v704_v13 = vpack.c.bf16 %v700_v6, %v700_v6  ;;  %v760_v0 = vpop.permute.xlu1 %759  ;;  %v758_v20 = vpop.permute.xlu0 %757  ;;  %v703_v25 = vpack.c.bf16 %v699_v22, %v699_v22 }
  0x98   : > { %v763_v24 = vsel %vm761_vm7, %v760_v0, %v758_v20  ;;  %v762_v31 = vsel %vm761_vm7, %v758_v20, %v760_v0 }
  0x99   : > { %v778_v26 = vmul.f32 %v2053_v23, %v763_v24  ;;  %v709_v28 = vsel %vm369_vm3, %v703_v25, 0  ;;  %v777_v35 = vmul.f32 %v2063_v29, %v762_v31  ;;  %v1007_v24 = vld [vmem:[%s2296_s6] sm:$0xff] }
  0x9a   : > { %v1008_v25 = vld [vmem:[%s2297_s7] sm:$0xff] }
  0x9b   : > { %v782_v30 = vpack.c.bf16 %v778_v26, %v778_v26  ;;  %v838_v33 = vpop.permute.xlu1 %837  ;;  %v836_v34 = vpop.permute.xlu0 %835  ;;  %v781_v38 = vpack.c.bf16 %v777_v35, %v777_v35 }
  0x9c   : > { %v841_v37 = vsel %vm839_vm8, %v838_v33, %v836_v34  ;;  %v840_v45 = vsel %vm839_vm8, %v836_v34, %v838_v33 }
  0x9d   : > { %1661 = vmatmul.mubr.msk.bf16.vlgmr.msra.gmra.mrb[0].mxu0 %vm365_vm4, %v336_v52  ;;  %v856_v39 = vmul.f32 %v2076_v36, %v841_v37  ;;  %v787_v42 = vsel %vm369_vm3, %v781_v38, 0  ;;  %v855_v50 = vmul.f32 %v2086_v43, %v840_v45 }
  0x9e   : > { %503 = vmatpush1.bf16.msra.mxu0 %v497_v53  ;;  %534 = vmatprep.mubr.bf16.mxu0 %v1811_v1 }
  0x9f   : > { %1668 = vmatprep.subr.msk.bf16.mxu0 %vm369_vm3, %v570_v55  ;;  %v860_v44 = vpack.c.bf16 %v856_v39, %v856_v39  ;;  %v916_v47 = vpop.permute.xlu1 %915  ;;  %v914_v49 = vpop.permute.xlu0 %913  ;;  %v859_v53 = vpack.c.bf16 %v855_v50, %v855_v50 }
  0xa0   : > { %v919_v52 = vsel %vm917_vm9, %v916_v47, %v914_v49  ;;  %v918_v9 = vsel %vm917_vm9, %v914_v49, %v916_v47 }
  0xa1   : > { %v934_v55 = vmul.f32 %v2099_v51, %v919_v52  ;;  %v865_v57 = vsel %vm369_vm3, %v859_v53, 0 }
  0xa9   : > { %1665 = vmatmul.mubr.msk.bf16.vlgmr.msra.gmra.mrb[0].mxu0 %vm365_vm4, %v1663_v59  ;;  %v938_v59 = vpack.c.bf16 %v934_v55, %v934_v55 }
  0xaa   : > { %581 = vmatpush1.bf16.msra.mxu0 %v575_v60  ;;  %612 = vmatprep.mubr.bf16.mxu0 %v1811_v1  ;;  %v933_v60 = vmul.f32 %v2109_v58, %v918_v9  ;;  %v1017_v9 = vld [vmem:[%s2295_s5] sm:$0xf] }
  0xab   : > { %1671 = vmatprep.subr.msk.bf16.mxu0 %vm369_vm3, %v626_v61 }
  0xac   : > { %v937_v61 = vpack.c.bf16 %v933_v60, %v933_v60 }
  0xae   : > { %v943_v8 = vsel %vm369_vm3, %v937_v61, 0 }
  0xb0   : > { %v994_v3 = vpop.permute.xlu0 %993  ;;  %v1001_v5 = vpop.permute.xlu1 %1000 }
  0xb5   : > { %1669 = vmatmul.mubr.msk.bf16.vlgmr.msra.gmra.mrb[0].mxu0 %vm365_vm4, %v1667_v10 }
  0xb6   : > { %637 = vmatpush1.bf16.msra.mxu0 %v631_v11  ;;  %668 = vmatprep.mubr.bf16.mxu0 %v1811_v1 }
  0xb7   : > { %1675 = vmatprep.subr.msk.bf16.mxu0 %vm369_vm3, %v704_v13 }
  0xc1   : > { %1672 = vmatmul.mubr.msk.bf16.vlgmr.msra.gmra.mrb[0].mxu0 %vm365_vm4, %v1670_v27 }
  0xc2   : > { %715 = vmatpush1.bf16.msra.mxu0 %v709_v28  ;;  %746 = vmatprep.mubr.bf16.mxu0 %v1811_v1 }
  0xc3   : > { %1679 = vmatprep.subr.msk.bf16.mxu0 %vm369_vm3, %v782_v30 }
  0xcd   : > { %1676 = vmatmul.mubr.msk.bf16.vlgmr.msra.gmra.mrb[0].mxu0 %vm365_vm4, %v1674_v40 }
  0xce   : > { %793 = vmatpush1.bf16.msra.mxu0 %v787_v42  ;;  %824 = vmatprep.mubr.bf16.mxu0 %v1811_v1 }
  0xcf   : > { %1683 = vmatprep.subr.msk.bf16.mxu0 %vm369_vm3, %v860_v44  ;;  %v1689_v44 = vld [vmem:[%s2295_s5 + $0x4] sm:$0xf] }
  0xd9   : > { %1680 = vmatmul.mubr.msk.bf16.vlgmr.msra.gmra.mrb[0].mxu0 %vm365_vm4, %v1678_v56 }
  0xda   : > { %871 = vmatpush1.bf16.msra.mxu0 %v865_v57  ;;  %902 = vmatprep.mubr.bf16.mxu0 %v1811_v1 }
  0xdb   : > { %1687 = vmatprep.subr.msk.bf16.mxu0 %vm369_vm3, %v938_v59 }
  0xe5   : > { %1684 = vmatmul.mubr.msk.bf16.vlgmr.msra.gmra.mrb[0].mxu0 %vm365_vm4, %v1682_v62 }
  0xe6   : > { %949 = vmatpush1.bf16.msra.mxu0 %v943_v8  ;;  %980 = vmatprep.mubr.bf16.mxu0 %v1811_v1  ;;  %v1694_v8 = vld [vmem:[%s2295_s5 + $0x8] sm:$0xf] }
  0xf1   : > { %1688 = vmatmul.mubr.msk.bf16.vlgmr.msra.gmra.mrb[0].mxu0 %vm365_vm4, %v1686_v63 }
 0x1c4   : > { %v982_v2 = vpop.f32.mrb[0].mxu0 }
 0x1c5   : > { %v996_v6 = vmul.f32 %v994_v3, %v982_v2  ;;  %v984_v10 = vpop.f32.mrb[1].mxu0 }
 0x1c6   : > { %v997_v11 = vmul.f32 %v994_v3, %v984_v10  ;;  %v986_v13 = vpop.f32.mrb[2].mxu0 }
 0x1c7   : > { %v1003_v14 = vadd.f32 %v1001_v5, %v996_v6  ;;  %v987_v19 = vpop.f32.mrb[3].mxu0 }
 0x1c8   : > { %v1004_v0 = vadd.f32 %v1001_v5, %v997_v11  ;;  %v1697_v11 = vld [vmem:[%s2295_s5 + $0xc] sm:$0xf] }
 0x1c9   : > { %v2127_v20 = vmax.f32 %v1003_v14, 0.0 }
 0x1ca   : > { %v2129_v22 = vmax.f32 %v1004_v0, 0.0 }
 0x1cb   : > { %1020 = vrot.lane.b32.xlu1 %v2127_v20, %s1813_s12  ;;  %v1264_v10 = vpack.c.bf16 %v2127_v20, %v2127_v20 }
 0x1cc   : > { %1022 = vrot.lane.b32.xlu0 %v2129_v22, %s1813_s12  ;;  %v1265_v3 = vpack.c.bf16 %v2129_v22, %v2129_v22 }
 0x1cd   : > { %v1270_v14 = vsel %vm1036_vm10, %v1264_v10, 0 }
 0x1cf   : > { %1009 = vrot.lane.b32.xlu1 %v2127_v20, %s1812_s11 }
 0x1d0   : > { %1011 = vrot.lane.b32.xlu0 %v2129_v22, %s1812_s11 }
 0x1d3   : > { %1134 = vrot.lane.b32.xlu1 %v2127_v20, %s1814_s13 }
 0x1d4   : > { %1136 = vrot.lane.b32.xlu0 %v2129_v22, %s1814_s13  ;;  %s1718_s13 = sshll.u32 %s2300_s28, 4 }
 0x1d7   : > { %1198 = vrot.lane.b32.xlu1 %v2127_v20, %s1815_s14 }
 0x1d8   : > { %1200 = vrot.lane.b32.xlu0 %v2129_v22, %s1815_s14 }
 0x1db   : > { %1318 = vrot.lane.b32.xlu1 %v2127_v20, %s1816_s15 }
 0x1dc   : > { %1320 = vrot.lane.b32.xlu0 %v2129_v22, %s1816_s15 }
 0x1df   : > { %1382 = vrot.lane.b32.xlu1 %v2127_v20, %s1817_s16 }
 0x1e0   : > { %1384 = vrot.lane.b32.xlu0 %v2129_v22, %s1817_s16  ;;  %s305_s16 = scalar_lea.vmem %s2298_s8, %s1718_s13 }
 0x1e3   : > { %1446 = vrot.lane.b32.xlu1 %v2127_v20, %s1818_s17 }
 0x1e4   : > { %1448 = vrot.lane.b32.xlu0 %v2129_v22, %s1818_s17 }
 0x1e7   : > { %1510 = vrot.lane.b32.xlu1 %v2127_v20, %s1819_s18 }
 0x1e8   : > { %1512 = vrot.lane.b32.xlu0 %v2129_v22, %s1819_s18 }
 0x1eb   : > { %1576 = vperm.xlu1 %1801, %v1007_v24  }
 0x1ec   : > { %1583 = vperm.xlu0 %1800, %v1008_v25  }
 0x23d   : > { %v1021_v26 = vpop.permute.xlu1 %1020 }
 0x23e   : > { %v1023_v27 = vpop.permute.xlu0 %1022 }
 0x23f   : > { %v1024_v28 = vsel %vm343_vm1, %v1021_v26, %v1023_v27  ;;  %v1025_v30 = vsel %vm343_vm1, %v1023_v27, %v1021_v26  ;;  %v1700_v26 = vld [vmem:[%s2295_s5 + $0x10] sm:$0xf] }
 0x240   : > { %v1026_v31 = vmul.f32 %v1025_v30, %v1951_v17  ;;  %v1027_v32 = vmul.f32 %v1024_v28, %v1954_v18 }
 0x241   : > { %v1010_v33 = vpop.permute.xlu1 %1009 }
 0x242   : > { %v1012_v34 = vpop.permute.xlu0 %1011  ;;  %v1031_v35 = vpack.c.bf16 %v1027_v32, %v1027_v32  ;;  %v1030_v37 = vpack.c.bf16 %v1026_v31, %v1026_v31 }
 0x243   : > { %v1013_v38 = vsel %vm319_vm0, %v1010_v33, %v1012_v34  ;;  %v1014_v39 = vsel %vm319_vm0, %v1012_v34, %v1010_v33 }
 0x244   : > { %v1015_v40 = vmul.f32 %v1014_v39, %v1945_v15  ;;  %v1016_v42 = vmul.f32 %v1013_v38, %v1948_v16  ;;  %1690 = vmatprep.subr.msk.bf16.mxu1 %vm1036_vm10, %v1031_v35  ;;  %v1038_v17 = vsel %vm1036_vm10, %v1030_v37, 0  ;;  %v1703_v35 = vld [vmem:[%s2295_s5 + $0x14] sm:$0xf] }
 0x245   : > { %v1135_v18 = vpop.permute.xlu1 %1134  ;;  %1044 = vmatpush1.bf16.msra.mxu1 %v1038_v17 }
 0x246   : > { %v1018_v45 = vpack.c.bf16 %v1015_v40, %v1015_v40  ;;  %v1019_v46 = vpack.c.bf16 %v1016_v42, %v1016_v42  ;;  %v1137_v47 = vpop.permute.xlu0 %1136 }
 0x247   : > { %v1138_v49 = vsel %vm471_vm2, %v1135_v18, %v1137_v47  ;;  %v1139_v50 = vsel %vm471_vm2, %v1137_v47, %v1135_v18 }
 0x248   : > { %v1141_v15 = vmul.f32 %v1138_v49, %v1958_v21  ;;  %1691 = vmatmul.mubr.msk.bf16.vlgmr.msra.gmra.mrb[0].mxu1 %vm1032_vm11, %v1689_v44  ;;  %1692 = vmatprep.subr.msk.bf16.mxu1 %vm1036_vm10, %v1019_v46  ;;  %v1088_v16 = vsel %vm1036_vm10, %v1018_v45, 0  ;;  %v1140_v56 = vmul.f32 %v1139_v50, %v1983_v41  ;;  %v1706_v44 = vld [vmem:[%s2295_s5 + $0x18] sm:$0xf]  ;;  %v1709_v49 = vld [vmem:[%s2295_s5 + $0x1c] sm:$0xf] }
 0x249   : > { %1094 = vmatpush1.bf16.msra.mxu1 %v1088_v16  ;;  %1125 = vmatprep.mubr.bf16.mxu1 %v1811_v1  ;;  %v1199_v53 = vpop.permute.xlu1 %1198 }
 0x24a   : > { %v1145_v52 = vpack.c.bf16 %v1141_v15, %v1141_v15  ;;  %v1201_v55 = vpop.permute.xlu0 %1200  ;;  %v1144_v57 = vpack.c.bf16 %v1140_v56, %v1140_v56 }
 0x24b   : > { %v1202_v21 = vsel %vm549_vm5, %v1199_v53, %v1201_v55  ;;  %v1203_v41 = vsel %vm549_vm5, %v1201_v55, %v1199_v53 }
 0x24c   : > { %1695 = vmatprep.subr.msk.bf16.mxu1 %vm1036_vm10, %v1145_v52  ;;  %v1205_v59 = vmul.f32 %v1202_v21, %v1996_v48  ;;  %v1150_v61 = vsel %vm1036_vm10, %v1144_v57, 0  ;;  %v1204_v62 = vmul.f32 %v1203_v41, %v2006_v54 }
 0x24d   : > { %v1319_v2 = vpop.permute.xlu1 %1318 }
 0x24e   : > { %v1209_v60 = vpack.c.bf16 %v1205_v59, %v1205_v59  ;;  %v1208_v48 = vpack.c.bf16 %v1204_v62, %v1204_v62  ;;  %v1321_v5 = vpop.permute.xlu0 %1320 }
 0x24f   : > { %v1323_v54 = vsel %vm683_vm6, %v1321_v5, %v1319_v2  ;;  %v1322_v19 = vsel %vm683_vm6, %v1319_v2, %v1321_v5 }
 0x250   : > { %v1214_v63 = vsel %vm1036_vm10, %v1208_v48, 0  ;;  %v1325_v6 = vmul.f32 %v1323_v54, %v2028_v4  ;;  %v1324_v20 = vmul.f32 %v1322_v19, %v2040_v12 }
 0x251   : > { %v1383_v0 = vpop.permute.xlu1 %1382 }
 0x252   : > { %v1329_v13 = vpack.c.bf16 %v1325_v6, %v1325_v6  ;;  %v1385_v4 = vpop.permute.xlu0 %1384  ;;  %v1328_v24 = vpack.c.bf16 %v1324_v20, %v1324_v20 }
 0x253   : > { %v1387_v22 = vsel %vm761_vm7, %v1385_v4, %v1383_v0  ;;  %v1386_v30 = vsel %vm761_vm7, %v1383_v0, %v1385_v4 }
 0x254   : > { %1693 = vmatmul.mubr.msk.bf16.vlgmr.msra.gmra.mrb[0].mxu1 %vm1032_vm11, %v1017_v9  ;;  %v1389_v25 = vmul.f32 %v1387_v22, %v2053_v23  ;;  %v1334_v28 = vsel %vm1036_vm10, %v1328_v24, 0  ;;  %v1388_v23 = vmul.f32 %v1386_v30, %v2063_v29 }
 0x255   : > { %1156 = vmatpush1.bf16.msra.mxu1 %v1150_v61  ;;  %1187 = vmatprep.mubr.bf16.mxu1 %v1811_v1  ;;  %v1447_v12 = vpop.permute.xlu1 %1446 }
 0x256   : > { %1698 = vmatprep.subr.msk.bf16.mxu1 %vm1036_vm10, %v1209_v60  ;;  %v1393_v27 = vpack.c.bf16 %v1389_v25, %v1389_v25  ;;  %v1449_v31 = vpop.permute.xlu0 %1448  ;;  %v1392_v33 = vpack.c.bf16 %v1388_v23, %v1388_v23 }
 0x257   : > { %v1451_v32 = vsel %vm839_vm8, %v1449_v31, %v1447_v12  ;;  %v1450_v39 = vsel %vm839_vm8, %v1447_v12, %v1449_v31 }
 0x258   : > { %v1453_v34 = vmul.f32 %v1451_v32, %v2076_v36  ;;  %v1398_v38 = vsel %vm1036_vm10, %v1392_v33, 0  ;;  %v1452_v36 = vmul.f32 %v1450_v39, %v2086_v43 }
 0x259   : > { %v1511_v29 = vpop.permute.xlu1 %1510 }
 0x25a   : > { %v1457_v37 = vpack.c.bf16 %v1453_v34, %v1453_v34  ;;  %v1513_v40 = vpop.permute.xlu0 %1512  ;;  %v1456_v17 = vpack.c.bf16 %v1452_v36, %v1452_v36 }
 0x25b   : > { %v1515_v42 = vsel %vm917_vm9, %v1513_v40, %v1511_v29  ;;  %v1514_v47 = vsel %vm917_vm9, %v1511_v29, %v1513_v40 }
 0x25c   : > { %v1517_v18 = vmul.f32 %v1515_v42, %v2099_v51  ;;  %v1462_v46 = vsel %vm1036_vm10, %v1456_v17, 0  ;;  %v1516_v43 = vmul.f32 %v1514_v47, %v2109_v58 }
 0x25e   : > { %v1521_v45 = vpack.c.bf16 %v1517_v18, %v1517_v18  ;;  %v1520_v51 = vpack.c.bf16 %v1516_v43, %v1516_v43 }
 0x260   : > { %1696 = vmatmul.mubr.msk.bf16.vlgmr.msra.gmra.mrb[0].mxu1 %vm1032_vm11, %v1694_v8  ;;  %v1526_v15 = vsel %vm1036_vm10, %v1520_v51, 0 }
 0x261   : > { %1220 = vmatpush1.bf16.msra.mxu1 %v1214_v63  ;;  %1251 = vmatprep.mubr.bf16.mxu1 %v1811_v1 }
 0x262   : > { %1701 = vmatprep.subr.msk.bf16.mxu1 %vm1036_vm10, %v1265_v3 }
 0x26a   : > { %v1577_v16 = vpop.permute.xlu1 %1576 }
 0x26b   : > { %v1584_v53 = vpop.permute.xlu0 %1583 }
 0x26c   : > { %1699 = vmatmul.mubr.msk.bf16.vlgmr.msra.gmra.mrb[0].mxu1 %vm1032_vm11, %v1697_v11 }
 0x26d   : > { %1276 = vmatpush1.bf16.msra.mxu1 %v1270_v14  ;;  %1307 = vmatprep.mubr.bf16.mxu1 %v1811_v1 }
 0x26e   : > { %1704 = vmatprep.subr.msk.bf16.mxu1 %vm1036_vm10, %v1329_v13 }
 0x278   : > { %1702 = vmatmul.mubr.msk.bf16.vlgmr.msra.gmra.mrb[0].mxu1 %vm1032_vm11, %v1700_v26 }
 0x279   : > { %1340 = vmatpush1.bf16.msra.mxu1 %v1334_v28  ;;  %1371 = vmatprep.mubr.bf16.mxu1 %v1811_v1 }
 0x27a   : > { %1707 = vmatprep.subr.msk.bf16.mxu1 %vm1036_vm10, %v1393_v27 }
 0x284   : > { %1705 = vmatmul.mubr.msk.bf16.vlgmr.msra.gmra.mrb[0].mxu1 %vm1032_vm11, %v1703_v35 }
 0x285   : > { %1404 = vmatpush1.bf16.msra.mxu1 %v1398_v38  ;;  %1435 = vmatprep.mubr.bf16.mxu1 %v1811_v1 }
 0x286   : > { %1710 = vmatprep.subr.msk.bf16.mxu1 %vm1036_vm10, %v1457_v37 }
 0x290   : > { %1708 = vmatmul.mubr.msk.bf16.vlgmr.msra.gmra.mrb[0].mxu1 %vm1032_vm11, %v1706_v44 }
 0x291   : > { %1468 = vmatpush1.bf16.msra.mxu1 %v1462_v46  ;;  %1499 = vmatprep.mubr.bf16.mxu1 %v1811_v1 }
 0x292   : > { %1713 = vmatprep.subr.msk.bf16.mxu1 %vm1036_vm10, %v1521_v45 }
 0x29c   : > { %1711 = vmatmul.mubr.msk.bf16.vlgmr.msra.gmra.mrb[0].mxu1 %vm1032_vm11, %v1709_v49 }
 0x29d   : > { %1532 = vmatpush1.bf16.msra.mxu1 %v1526_v15  ;;  %1563 = vmatprep.mubr.bf16.mxu1 %v1811_v1 }
 0x2a8   : > { %1714 = vmatmul.mubr.msk.bf16.vlgmr.msra.gmra.mrb[0].mxu1 %vm1032_vm11, %v1712_v7 }
 0x37b   : > { %v1565_v58 = vpop.f32.mrb[0].mxu1 }
 0x37c   : > { %v1579_v50 = vmul.f32 %v1577_v16, %v1565_v58  ;;  %v1567_v52 = vpop.f32.mrb[1].mxu1 }
 0x37d   : > { %v1580_v55 = vmul.f32 %v1577_v16, %v1567_v52  ;;  %v1569_v56 = vpop.f32.mrb[2].mxu1 }
 0x37e   : > { %v1586_v21 = vadd.f32 %v1584_v53, %v1579_v50  ;;  %v1570_v57 = vpop.f32.mrb[3].mxu1 }
 0x37f   : > { %v1587_v1 = vadd.f32 %v1584_v53, %v1580_v55 }
 0x380   : > { %v1588_v59 = vmax.f32 %v1586_v21, 0.0 }
 0x381   : > { %v1589_v9 = vmax.f32 %v1587_v1, 0.0 }
 0x382   : > { %1590 = vst [vmem:[%s305_s16] sm:$0xff] %v1588_v59 }
 0x383   : > { %1591 = vst [vmem:[%s305_s16 + $0x8] sm:$0xff] %v1589_v9 }
 0x384 PF: > { %s18_s27 = sadd.s32 1, %s1809_s27  }
 0x385   : > { %p15_p4 = scmp.ge.s32.totalorder %s18_s27, 4  }
 0x387   :  { %17 = sbr.rel (!%p15_p4) target bundleno = 1 (0x1), region = 105 }

</bundles_post_ra>
